<compile_context>
chip_gen: v7x
topology: tpu7x:2x2x1
jax: 0.10.0
libtpu: 0.0.40
codegen_flags: <defaults>
</compile_context>

<pallas_src>
import jax
import jax.numpy as jnp
from jax import lax
from jax.experimental import pallas as pl
from jax.experimental.pallas import tpu as pltpu


def gcn_perturb_kernel(p_symm_ref, sub_adj_ref, x_ref,
                       w1_ref, b1_ref, w2_ref, b2_ref, w3_ref, b3_ref,
                       wl1_ref, wl2_ref, wl3_ref, bl_ref, out_ref):
    f32 = jnp.float32
    bf16 = jnp.bfloat16

    p_symm = p_symm_ref[...]
    sub_adj = sub_adj_ref[...]

    # A_tilde = sigmoid(P_hat_symm) * sub_adj   (f32; sigmoid hits the EUP)
    a_tilde = jax.nn.sigmoid(p_symm) * sub_adj

    # norm_adj = D^-1/2 @ A_tilde @ D^-1/2 expressed as rank-1 broadcast
    # scaling: no N*N*N matmuls, no materialized diagonal.  A_tilde is
    # symmetric by construction (P_hat_symm symmetric, sub_adj undirected
    # adjacency), so the axis=0 column sums equal the axis=1 row sums the
    # reference uses for the degree matrix.
    deg_row = jnp.sum(a_tilde, axis=1, keepdims=True)            # (N, 1)
    deg_col = jnp.sum(a_tilde, axis=0, keepdims=True)            # (1, N)
    d_row = jnp.where(deg_row > 0.0, lax.rsqrt(deg_row), 0.0)    # inf (deg 0) -> 0
    d_col = jnp.where(deg_col > 0.0, lax.rsqrt(deg_col), 0.0)
    norm_adj = (d_row * a_tilde * d_col).astype(bf16)            # bf16 MXU operand

    x_in = x_ref[...].astype(bf16)

    # gc1: relu(norm_adj @ (x @ W1) + b1)
    s1 = jnp.dot(x_in, w1_ref[...].astype(bf16), preferred_element_type=f32)
    x1 = jnp.maximum(
        jnp.dot(norm_adj, s1.astype(bf16), preferred_element_type=f32) + b1_ref[...],
        0.0)
    x1_b = x1.astype(bf16)
    # TODO(synk): F.dropout is identity in eval mode; training-mode dropout not implemented.

    # gc2: relu(norm_adj @ (x1 @ W2) + b2)
    s2 = jnp.dot(x1_b, w2_ref[...].astype(bf16), preferred_element_type=f32)
    x2 = jnp.maximum(
        jnp.dot(norm_adj, s2.astype(bf16), preferred_element_type=f32) + b2_ref[...],
        0.0)
    x2_b = x2.astype(bf16)

    # gc3: norm_adj @ (x2 @ W3) + b3   (no relu)
    s3 = jnp.dot(x2_b, w3_ref[...].astype(bf16), preferred_element_type=f32)
    x3 = jnp.dot(norm_adj, s3.astype(bf16), preferred_element_type=f32) + b3_ref[...]
    x3_b = x3.astype(bf16)

    # lin(cat(x1, x2, x3, dim=1)) without materializing the concat: three
    # matmuls against the row-split, lane-padded head weight, summed in f32.
    # Padded class columns carry weight 0 / bias -1e9, so they never win the
    # row max and contribute exp(.) = 0 to the softmax denominator.
    logits = (jnp.dot(x1_b, wl1_ref[...].astype(bf16), preferred_element_type=f32)
              + jnp.dot(x2_b, wl2_ref[...].astype(bf16), preferred_element_type=f32)
              + jnp.dot(x3_b, wl3_ref[...].astype(bf16), preferred_element_type=f32)
              + bl_ref[...])                                      # (N, c_pad)

    # log_softmax along dim=1; lane-dense (N, c_pad) store, wrapper slices.
    m = jnp.max(logits, axis=1, keepdims=True)
    z = logits - m
    lse = jnp.log(jnp.sum(jnp.exp(z), axis=1, keepdims=True))
    out_ref[...] = z - lse


def create_symm_matrix_from_vec(p_vec, n):
    # Gather-based (scatter-free) equivalent of the reference utility: fill the
    # lower triangle (incl. diag) row-major from p_vec, then symmetrize.
    i = jnp.arange(n)[:, None]
    j = jnp.arange(n)[None, :]
    lo = jnp.minimum(i, j)
    hi = jnp.maximum(i, j)
    return p_vec[hi * (hi + 1) // 2 + lo]


@jax.jit
def gcn_synthetic_perturb_forward(p_vec, sub_adj, x, params):
    n = sub_adj.shape[0]
    # TODO(synk): the P_vec -> symmetric-matrix triangular gather stays in plain
    # JAX; an in-kernel arbitrary-index gather has no clean Mosaic lowering.
    p_hat_symm = create_symm_matrix_from_vec(p_vec, n)

    w1, b1, w2, b2, w3, b3, wl, bl = params
    nhid = w1.shape[1]
    nout = w3.shape[1]
    nclass = wl.shape[0]
    c_pad = ((nclass + 127) // 128) * 128                 # lane-dense output width

    # Head weight split by input chunk (x1 | x2 | x3) and lane-padded to c_pad
    # with zeros; bias padded with -1e9 so in-kernel log_softmax ignores the
    # padded class columns.
    wl_t = wl.T.astype(jnp.float32)                        # (2*nhid + nout, nclass)
    def pad_cols(m):
        return jnp.pad(m, ((0, 0), (0, c_pad - nclass)))
    wl1 = pad_cols(wl_t[:nhid])
    wl2 = pad_cols(wl_t[nhid:2 * nhid])
    wl3 = pad_cols(wl_t[2 * nhid:])
    bl_pad = jnp.pad(bl.reshape(1, -1).astype(jnp.float32),
                     ((0, 0), (0, c_pad - nclass)), constant_values=-1e9)

    args = (p_hat_symm, sub_adj, x,
            w1, b1.reshape(1, -1), w2, b2.reshape(1, -1), w3, b3.reshape(1, -1),
            wl1, wl2, wl3, bl_pad)

    vmem = pl.BlockSpec(memory_space=pltpu.MemorySpace.VMEM)
    # Whole-problem-in-VMEM (no grid): a handful of N x N matrices plus
    # features/weights must be co-resident.  Size the scoped limit accordingly,
    # capped at 64 MiB so it is valid on v7x as well as v5e/v6e.
    vmem_limit = int(min(64 * 2**20, max(32 * 2**20, 8 * n * n * 4 + (4 << 20))))

    out_pad = pl.pallas_call(
        gcn_perturb_kernel,
        out_shape=jax.ShapeDtypeStruct((n, c_pad), jnp.float32),
        in_specs=[vmem] * len(args),
        out_specs=vmem,
        compiler_params=pltpu.CompilerParams(vmem_limit_bytes=vmem_limit),
    )(*args)
    return out_pad[:, :nclass]


if __name__ == "__main__":
    key = jax.random.PRNGKey(0)
    num_nodes, nfeat, nhid, nout, nclass = 16, 8, 32, 32, 4
    k = jax.random.split(key, 10)

    # Symmetric 0/1 adjacency with self-loops (this is both `adj` and `sub_adj`).
    upper = (jax.random.uniform(k[0], (num_nodes, num_nodes)) > 0.6).astype(jnp.float32)
    sub_adj = jnp.triu(upper, 1)
    sub_adj = sub_adj + sub_adj.T + jnp.eye(num_nodes, dtype=jnp.float32)

    x = jax.random.normal(k[1], (num_nodes, nfeat), jnp.float32)

    # P_vec = ones(P_vec_size); reset_parameters' torch.sub is not in-place -> stays ones.
    p_vec_size = (num_nodes * num_nodes - num_nodes) // 2 + num_nodes
    p_vec = jnp.ones((p_vec_size,), jnp.float32)

    def u(kk, shape, fan_in):
        b = 1.0 / jnp.sqrt(jnp.float32(fan_in))
        return jax.random.uniform(kk, shape, jnp.float32, -b, b)

    w1 = u(k[2], (nfeat, nhid), nfeat); b1 = u(k[3], (nhid,), nfeat)
    w2 = u(k[4], (nhid, nhid), nhid);   b2 = u(k[5], (nhid,), nhid)
    w3 = u(k[6], (nhid, nout), nhid);   b3 = u(k[7], (nout,), nhid)
    wl = u(k[8], (nclass, nhid + nhid + nout), nhid + nhid + nout)
    bl = u(k[9], (nclass,), nhid + nhid + nout)
    params = (w1, b1, w2, b2, w3, b3, wl, bl)

    out = gcn_synthetic_perturb_forward(p_vec, sub_adj, x, params)
    out = jax.block_until_ready(out)

    # Pure-JAX f32 reference (same semantics as the PyTorch forward, eval mode).
    p_hat = create_symm_matrix_from_vec(p_vec, num_nodes)
    a_t = jax.nn.sigmoid(p_hat) * sub_adj
    d = a_t.sum(axis=1)
    dinv = jnp.where(d > 0, d ** -0.5, 0.0)
    norm_adj = dinv[:, None] * a_t * dinv[None, :]
    x1 = jax.nn.relu(norm_adj @ (x @ w1) + b1)
    x2 = jax.nn.relu(norm_adj @ (x1 @ w2) + b2)
    x3 = norm_adj @ (x2 @ w3) + b3
    ref = jax.nn.log_softmax(jnp.concatenate([x1, x2, x3], axis=1) @ wl.T + bl, axis=1)

    assert out.shape == (num_nodes, nclass)
    # Kernel uses bf16 MXU operands with f32 accumulation -> relaxed tolerance
    # vs the f32 reference.
    assert jnp.allclose(out, ref, atol=2e-2, rtol=2e-2), "mismatch vs reference"
    print("KERNEL_OK")
</pallas_src>

<mosaic_0001>
module attributes {stable_mosaic.version = 11 : i64} {
  func.func @gcn_perturb_kernel(%arg0: memref<16x16xf32, #tpu.memory_space<vmem>>, %arg1: memref<16x16xf32, #tpu.memory_space<vmem>>, %arg2: memref<16x8xf32, #tpu.memory_space<vmem>>, %arg3: memref<8x32xf32, #tpu.memory_space<vmem>>, %arg4: memref<1x32xf32, #tpu.memory_space<vmem>>, %arg5: memref<32x32xf32, #tpu.memory_space<vmem>>, %arg6: memref<1x32xf32, #tpu.memory_space<vmem>>, %arg7: memref<32x32xf32, #tpu.memory_space<vmem>>, %arg8: memref<1x32xf32, #tpu.memory_space<vmem>>, %arg9: memref<32x128xf32, #tpu.memory_space<vmem>>, %arg10: memref<32x128xf32, #tpu.memory_space<vmem>>, %arg11: memref<32x128xf32, #tpu.memory_space<vmem>>, %arg12: memref<1x128xf32, #tpu.memory_space<vmem>>, %arg13: memref<16x128xf32, #tpu.memory_space<vmem>>) attributes {dimension_semantics = [], scalar_prefetch = 0 : i64, scratch_operands = 0 : i64, tpu.core_type = #tpu.core_type<tc>} {
    %c0 = arith.constant 0 : index
    %c0_0 = arith.constant 0 : index
    %0 = vector.load %arg0[%c0, %c0_0] : memref<16x16xf32, #tpu.memory_space<vmem>>, vector<16x16xf32>
    %c0_1 = arith.constant 0 : index
    %c0_2 = arith.constant 0 : index
    %1 = vector.load %arg1[%c0_1, %c0_2] : memref<16x16xf32, #tpu.memory_space<vmem>>, vector<16x16xf32>
    %2 = arith.negf %0 : vector<16x16xf32>
    %3 = math.exp %2 : vector<16x16xf32>
    %cst = arith.constant 1.000000e+00 : f32
    %4 = vector.broadcast %cst : f32 to vector<16x16xf32>
    %5 = arith.addf %4, %3 : vector<16x16xf32>
    %6 = arith.divf %4, %5 : vector<16x16xf32>
    %7 = arith.mulf %6, %1 : vector<16x16xf32>
    %cst_3 = arith.constant dense<0.000000e+00> : vector<16xf32>
    %8 = vector.multi_reduction <add>, %7, %cst_3 [1] : vector<16x16xf32> to vector<16xf32>
    %9 = vector.shape_cast %8 : vector<16xf32> to vector<16x1xf32>
    %cst_4 = arith.constant dense<0.000000e+00> : vector<16xf32>
    %10 = vector.multi_reduction <add>, %7, %cst_4 [0] : vector<16x16xf32> to vector<16xf32>
    %11 = vector.shape_cast %10 : vector<16xf32> to vector<1x16xf32>
    %cst_5 = arith.constant 0.000000e+00 : f32
    %12 = vector.broadcast %cst_5 : f32 to vector<16x1xf32>
    %13 = arith.cmpf ogt, %9, %12 : vector<16x1xf32>
    %14 = math.rsqrt %9 : vector<16x1xf32>
    %cst_6 = arith.constant 0.000000e+00 : f32
    %15 = vector.broadcast %cst_6 : f32 to vector<16x1xf32>
    %16 = arith.select %13, %14, %15 : vector<16x1xi1>, vector<16x1xf32>
    %cst_7 = arith.constant 0.000000e+00 : f32
    %17 = vector.broadcast %cst_7 : f32 to vector<1x16xf32>
    %18 = arith.cmpf ogt, %11, %17 : vector<1x16xf32>
    %19 = math.rsqrt %11 : vector<1x16xf32>
    %cst_8 = arith.constant 0.000000e+00 : f32
    %20 = vector.broadcast %cst_8 : f32 to vector<1x16xf32>
    %21 = arith.select %18, %19, %20 : vector<1x16xi1>, vector<1x16xf32>
    %22 = vector.broadcast %16 : vector<16x1xf32> to vector<16x16xf32>
    %23 = arith.mulf %22, %7 : vector<16x16xf32>
    %24 = vector.broadcast %21 : vector<1x16xf32> to vector<16x16xf32>
    %25 = arith.mulf %23, %24 : vector<16x16xf32>
    %26 = arith.truncf %25 : vector<16x16xf32> to vector<16x16xbf16>
    %c0_9 = arith.constant 0 : index
    %c0_10 = arith.constant 0 : index
    %27 = vector.load %arg2[%c0_9, %c0_10] : memref<16x8xf32, #tpu.memory_space<vmem>>, vector<16x8xf32>
    %28 = arith.truncf %27 : vector<16x8xf32> to vector<16x8xbf16>
    %c0_11 = arith.constant 0 : index
    %c0_12 = arith.constant 0 : index
    %29 = vector.load %arg3[%c0_11, %c0_12] : memref<8x32xf32, #tpu.memory_space<vmem>>, vector<8x32xf32>
    %30 = arith.truncf %29 : vector<8x32xf32> to vector<8x32xbf16>
    %cst_13 = arith.constant dense<0.000000e+00> : vector<16x32xf32>
    %31 = tpu.matmul %28, %30, %cst_13 {dimension_numbers = #tpu.dot_dimension_numbers<[1], [0], [0], [1], [0, 0, 1, 1], [], []>} : vector<16x8xbf16>, vector<8x32xbf16>, vector<16x32xf32> -> vector<16x32xf32>
    %32 = arith.truncf %31 : vector<16x32xf32> to vector<16x32xbf16>
    %cst_14 = arith.constant dense<0.000000e+00> : vector<16x32xf32>
    %33 = tpu.matmul %26, %32, %cst_14 {dimension_numbers = #tpu.dot_dimension_numbers<[1], [0], [0], [1], [0, 0, 1, 1], [], []>} : vector<16x16xbf16>, vector<16x32xbf16>, vector<16x32xf32> -> vector<16x32xf32>
    %c0_15 = arith.constant 0 : index
    %c0_16 = arith.constant 0 : index
    %34 = vector.load %arg4[%c0_15, %c0_16] : memref<1x32xf32, #tpu.memory_space<vmem>>, vector<1x32xf32>
    %35 = vector.broadcast %34 : vector<1x32xf32> to vector<16x32xf32>
    %36 = arith.addf %33, %35 : vector<16x32xf32>
    %cst_17 = arith.constant 0.000000e+00 : f32
    %37 = vector.broadcast %cst_17 : f32 to vector<16x32xf32>
    %38 = arith.maximumf %36, %37 : vector<16x32xf32>
    %39 = arith.truncf %38 : vector<16x32xf32> to vector<16x32xbf16>
    %c0_18 = arith.constant 0 : index
    %c0_19 = arith.constant 0 : index
    %40 = vector.load %arg5[%c0_18, %c0_19] : memref<32x32xf32, #tpu.memory_space<vmem>>, vector<32x32xf32>
    %41 = arith.truncf %40 : vector<32x32xf32> to vector<32x32xbf16>
    %cst_20 = arith.constant dense<0.000000e+00> : vector<16x32xf32>
    %42 = tpu.matmul %39, %41, %cst_20 {dimension_numbers = #tpu.dot_dimension_numbers<[1], [0], [0], [1], [0, 0, 1, 1], [], []>} : vector<16x32xbf16>, vector<32x32xbf16>, vector<16x32xf32> -> vector<16x32xf32>
    %43 = arith.truncf %42 : vector<16x32xf32> to vector<16x32xbf16>
    %cst_21 = arith.constant dense<0.000000e+00> : vector<16x32xf32>
    %44 = tpu.matmul %26, %43, %cst_21 {dimension_numbers = #tpu.dot_dimension_numbers<[1], [0], [0], [1], [0, 0, 1, 1], [], []>} : vector<16x16xbf16>, vector<16x32xbf16>, vector<16x32xf32> -> vector<16x32xf32>
    %c0_22 = arith.constant 0 : index
    %c0_23 = arith.constant 0 : index
    %45 = vector.load %arg6[%c0_22, %c0_23] : memref<1x32xf32, #tpu.memory_space<vmem>>, vector<1x32xf32>
    %46 = vector.broadcast %45 : vector<1x32xf32> to vector<16x32xf32>
    %47 = arith.addf %44, %46 : vector<16x32xf32>
    %cst_24 = arith.constant 0.000000e+00 : f32
    %48 = vector.broadcast %cst_24 : f32 to vector<16x32xf32>
    %49 = arith.maximumf %47, %48 : vector<16x32xf32>
    %50 = arith.truncf %49 : vector<16x32xf32> to vector<16x32xbf16>
    %c0_25 = arith.constant 0 : index
    %c0_26 = arith.constant 0 : index
    %51 = vector.load %arg7[%c0_25, %c0_26] : memref<32x32xf32, #tpu.memory_space<vmem>>, vector<32x32xf32>
    %52 = arith.truncf %51 : vector<32x32xf32> to vector<32x32xbf16>
    %cst_27 = arith.constant dense<0.000000e+00> : vector<16x32xf32>
    %53 = tpu.matmul %50, %52, %cst_27 {dimension_numbers = #tpu.dot_dimension_numbers<[1], [0], [0], [1], [0, 0, 1, 1], [], []>} : vector<16x32xbf16>, vector<32x32xbf16>, vector<16x32xf32> -> vector<16x32xf32>
    %54 = arith.truncf %53 : vector<16x32xf32> to vector<16x32xbf16>
    %cst_28 = arith.constant dense<0.000000e+00> : vector<16x32xf32>
    %55 = tpu.matmul %26, %54, %cst_28 {dimension_numbers = #tpu.dot_dimension_numbers<[1], [0], [0], [1], [0, 0, 1, 1], [], []>} : vector<16x16xbf16>, vector<16x32xbf16>, vector<16x32xf32> -> vector<16x32xf32>
    %c0_29 = arith.constant 0 : index
    %c0_30 = arith.constant 0 : index
    %56 = vector.load %arg8[%c0_29, %c0_30] : memref<1x32xf32, #tpu.memory_space<vmem>>, vector<1x32xf32>
    %57 = vector.broadcast %56 : vector<1x32xf32> to vector<16x32xf32>
    %58 = arith.addf %55, %57 : vector<16x32xf32>
    %59 = arith.truncf %58 : vector<16x32xf32> to vector<16x32xbf16>
    %c0_31 = arith.constant 0 : index
    %c0_32 = arith.constant 0 : index
    %60 = vector.load %arg9[%c0_31, %c0_32] : memref<32x128xf32, #tpu.memory_space<vmem>>, vector<32x128xf32>
    %61 = arith.truncf %60 : vector<32x128xf32> to vector<32x128xbf16>
    %cst_33 = arith.constant dense<0.000000e+00> : vector<16x128xf32>
    %62 = tpu.matmul %39, %61, %cst_33 {dimension_numbers = #tpu.dot_dimension_numbers<[1], [0], [0], [1], [0, 0, 1, 1], [], []>} : vector<16x32xbf16>, vector<32x128xbf16>, vector<16x128xf32> -> vector<16x128xf32>
    %c0_34 = arith.constant 0 : index
    %c0_35 = arith.constant 0 : index
    %63 = vector.load %arg10[%c0_34, %c0_35] : memref<32x128xf32, #tpu.memory_space<vmem>>, vector<32x128xf32>
    %64 = arith.truncf %63 : vector<32x128xf32> to vector<32x128xbf16>
    %cst_36 = arith.constant dense<0.000000e+00> : vector<16x128xf32>
    %65 = tpu.matmul %50, %64, %cst_36 {dimension_numbers = #tpu.dot_dimension_numbers<[1], [0], [0], [1], [0, 0, 1, 1], [], []>} : vector<16x32xbf16>, vector<32x128xbf16>, vector<16x128xf32> -> vector<16x128xf32>
    %66 = arith.addf %62, %65 : vector<16x128xf32>
    %c0_37 = arith.constant 0 : index
    %c0_38 = arith.constant 0 : index
    %67 = vector.load %arg11[%c0_37, %c0_38] : memref<32x128xf32, #tpu.memory_space<vmem>>, vector<32x128xf32>
    %68 = arith.truncf %67 : vector<32x128xf32> to vector<32x128xbf16>
    %cst_39 = arith.constant dense<0.000000e+00> : vector<16x128xf32>
    %69 = tpu.matmul %59, %68, %cst_39 {dimension_numbers = #tpu.dot_dimension_numbers<[1], [0], [0], [1], [0, 0, 1, 1], [], []>} : vector<16x32xbf16>, vector<32x128xbf16>, vector<16x128xf32> -> vector<16x128xf32>
    %70 = arith.addf %66, %69 : vector<16x128xf32>
    %c0_40 = arith.constant 0 : index
    %c0_41 = arith.constant 0 : index
    %71 = vector.load %arg12[%c0_40, %c0_41] : memref<1x128xf32, #tpu.memory_space<vmem>>, vector<1x128xf32>
    %72 = vector.broadcast %71 : vector<1x128xf32> to vector<16x128xf32>
    %73 = arith.addf %70, %72 : vector<16x128xf32>
    %cst_42 = arith.constant dense<0xFF800000> : vector<16xf32>
    %74 = vector.multi_reduction <maximumf>, %73, %cst_42 [1] : vector<16x128xf32> to vector<16xf32>
    %75 = vector.shape_cast %74 : vector<16xf32> to vector<16x1xf32>
    %76 = vector.broadcast %75 : vector<16x1xf32> to vector<16x128xf32>
    %77 = arith.subf %73, %76 : vector<16x128xf32>
    %78 = math.exp %77 : vector<16x128xf32>
    %cst_43 = arith.constant dense<0.000000e+00> : vector<16xf32>
    %79 = vector.multi_reduction <add>, %78, %cst_43 [1] : vector<16x128xf32> to vector<16xf32>
    %80 = vector.shape_cast %79 : vector<16xf32> to vector<16x1xf32>
    %81 = math.log %80 : vector<16x1xf32>
    %82 = vector.broadcast %81 : vector<16x1xf32> to vector<16x128xf32>
    %83 = arith.subf %77, %82 : vector<16x128xf32>
    %c0_44 = arith.constant 0 : index
    %c0_45 = arith.constant 0 : index
    %84 = vector.load %arg13[%c0_44, %c0_45] : memref<16x128xf32, #tpu.memory_space<vmem>>, vector<16x128xf32>
    tpu.vector_store %arg13[%c0_44, %c0_45], %83 {strides = array<i32>} : memref<16x128xf32, #tpu.memory_space<vmem>>, vector<16x128xf32>,
    return
  }
}

</mosaic_0001>

<bundles_post_ra>
// kernel: gcn_synthetic_perturb_forward.1
= control target key start
LH: loop header
LB: loop body
LE: loop exit
PB: predicated region body
PF: predicated region fallthrough
CT: control target
= control target key end

     0   :  { %v710_v0 = vmov 0.0   ;;  %vm100_vm0 = vcmask 1043456   ;;  %vm711_vm1 = vmmov 0   ;;  %vm96_vm2 = vcmask 64512   ;;  %s932_s3 = inlined_call_operand.vmem [shape: f32[8,32], index: 3, kind: input, shape index: {}]   ;;  %s933_s2 = inlined_call_operand.vmem [shape: f32[16,8], index: 2, kind: input, shape index: {}]   ;;  %s934_s0 = inlined_call_operand.vmem [shape: f32[16,16], index: 0, kind: input, shape index: {}]   ;;  %s935_s1 = inlined_call_operand.vmem [shape: f32[16,16], index: 1, kind: input, shape index: {}]   ;;  %s936_s5 = inlined_call_operand.vmem [shape: f32[32,32], index: 5, kind: input, shape index: {}]   ;;  %s937_s4 = inlined_call_operand.vmem [shape: f32[1,32], index: 4, kind: input, shape index: {}]   ;;  %s938_s7 = inlined_call_operand.vmem [shape: f32[32,32], index: 7, kind: input, shape index: {}]   ;;  %s939_s6 = inlined_call_operand.vmem [shape: f32[1,32], index: 6, kind: input, shape index: {}]   ;;  %s940_s10 = inlined_call_operand.vmem [shape: f32[32,128], index: 10, kind: input, shape index: {}]   ;;  %s941_s9 = inlined_call_operand.vmem [shape: f32[32,128], index: 9, kind: input, shape index: {}]   ;;  %s942_s11 = inlined_call_operand.vmem [shape: f32[32,128], index: 11, kind: input, shape index: {}]   ;;  %s943_s8 = inlined_call_operand.vmem [shape: f32[1,32], index: 8, kind: input, shape index: {}]   ;;  %s944_s12 = inlined_call_operand.vmem [shape: f32[1,128], index: 12, kind: input, shape index: {}]   ;;  %s945_s13 = inlined_call_operand.vmem [shape: f32[16,128], index: 13, kind: output, shape index: {}]  }
   0x1   :  { %622 = vmatprep.subr.bf16.mxu0 %v710_v0  ;;  %v94_v1 = vld [vmem:[%s932_s3] sm:$0xff]  ;;  %624 = vmatprep.mubr.msk.bf16.mxu0 %vm711_vm1, %v710_v0  ;;  %v92_v3 = vld [vmem:[%s933_s2 + $0x8] sm:$0xff]  ;;  %vm63_vm3 = vcmask 130048   ;;  %v202_v51 = vld [vmem:[%s936_s5 + $0x10] sm:$0xff]  ;;  %vm206_vm7 = vcmask 261120  }
   0x2   :  { %v91_v2 = vld [vmem:[%s933_s2] sm:$0xff]  ;;  %v95_v4 = vpack.c.bf16 %v94_v1, %v94_v1  ;;  %v46_v6 = vld [vmem:[%s934_s0 + $0x8] sm:$0xff]  ;;  %628 = vmatprep.subr.bf16.mxu1 %v710_v0  ;;  %630 = vmatprep.mubr.msk.bf16.mxu1 %vm711_vm1, %v710_v0  ;;  %v203_v52 = vld [vmem:[%s936_s5 + $0x18] sm:$0xff] }
   0x3   :  { %v45_v5 = vld [vmem:[%s934_s0] sm:$0xff]  ;;  %v585_v8 = vmul.f32 -1.442695, %v46_v6  ;;  %v93_v10 = vpack.c.bf16 %v92_v3, %v91_v2  ;;  %v48_v16 = vld [vmem:[%s935_s1 + $0x8] sm:$0xff]  ;;  %v205_v53 = vpack.c.bf16 %v203_v52, %v202_v51 }
   0x4   :  { %v584_v7 = vmul.f32 -1.442695, %v45_v5  ;;  %v102_v9 = vsel %vm100_vm0, %v95_v4, 0  ;;  %v47_v15 = vld [vmem:[%s935_s1] sm:$0xff]  ;;  %v201_v49 = vld [vmem:[%s936_s5 + $0x8] sm:$0xff] }
   0x5   :  { %623 = vmatpush3.bf16.msra.mxu0 %v102_v9  ;;  %v200_v48 = vld [vmem:[%s936_s5] sm:$0xff]  ;;  %v305_v9 = vld [vmem:[%s938_s7 + $0x10] sm:$0xff] }
   0x6   :  { %688 = vpow2.f32 %v584_v7  ;;  %634 = vmatprep.subr.bf16.mxu0 %v710_v0  ;;  %v204_v50 = vpack.c.bf16 %v201_v49, %v200_v48  ;;  %v587_v54 = vld [vmem:[%s937_s4] ss:$0 sm:$0xff]  ;;  %v304_v7 = vld [vmem:[%s938_s7 + $0x8] sm:$0xff] }
   0x7   :  { %690 = vpow2.f32 %v585_v8  ;;  %v303_v6 = vld [vmem:[%s938_s7] sm:$0xff] }
   0x8   :  { %625 = vmatmul.mubr.msk.bf16.vlgmr.msra.gmra.mrb[0].mxu0 %vm96_vm2, %v93_v10  ;;  %v307_v8 = vpack.c.bf16 %v304_v7, %v303_v6  ;;  %v306_v10 = vld [vmem:[%s938_s7 + $0x18] sm:$0xff]  ;;  %v593_v49 = vld [vmem:[%s943_s8] ss:$0 sm:$0xff] }
   0x9   :  { %638 = vmatprep.mubr.msk.bf16.mxu0 %vm711_vm1, %v710_v0  ;;  %635 = vmatpush3.bf16.msra.mxu0 %v204_v50 }
   0xa   :  { %636 = vmatprep.subr.bf16.mxu0 %v710_v0 }
   0xd   :  { %637 = vmatpush3.bf16.msra.mxu0 %v205_v53 }
   0xe   :  { %648 = vmatprep.subr.bf16.mxu0 %v710_v0 }
  0x10   :  { %v689_v11 = vpop.eup %688 }
  0x11   :  { %v691_v12 = vpop.eup %690  ;;  %v55_v13 = vadd.f32 1.0, %v689_v11  ;;  %v308_v11 = vpack.c.bf16 %v306_v10, %v305_v9 }
  0x12   :  { %v56_v14 = vadd.f32 1.0, %v691_v12  ;;  %v590_v12 = vld [vmem:[%s939_s6] ss:$0 sm:$0xff] }
  0x13   :  { %692 = vrcp.f32 %v55_v13 }
  0x14   :  { %694 = vrcp.f32 %v56_v14 }
  0x1d   :  { %v693_v17 = vpop.eup %692 }
  0x1e   :  { %v695_v18 = vpop.eup %694  ;;  %v61_v19 = vmul.f32 %v693_v17, %v47_v15 }
  0x1f   :  { %v62_v20 = vmul.f32 %v695_v18, %v48_v16 }
  0x20   :  { %v64_v21 = vsel %vm63_vm3, %v61_v19, 0.0 }
  0x21   :  { %65 = vadd.xlane.f32.xlu0 %v64_v21  ;;  %v67_v22 = vsel %vm63_vm3, %v62_v20, 0.0 }
  0x22   :  { %v70_v23 = vadd.f32 %v67_v22, %v64_v21 }
  0x24   :  { %v71_v24 = vrot.slane %v70_v23, 4 }
  0x25   :  { %68 = vadd.xlane.f32.xlu0 %v67_v22 }
  0x26   :  { %v72_v25 = vadd.f32 %v71_v24, %v70_v23 }
  0x28   :  { %v73_v26 = vrot.slane %v72_v25, 2 }
  0x2a   :  { %v74_v28 = vadd.f32 %v73_v26, %v72_v25  ;;  %v411_v25 = vld [vmem:[%s940_s10 + $0x10] sm:$0xff]  ;;  %v412_v26 = vld [vmem:[%s940_s10 + $0x18] sm:$0xff] }
  0x2c   :  { %v75_v29 = vrot.slane %v74_v28, 1 }
  0x2e   :  { %v76_v31 = vadd.f32 %v75_v29, %v74_v28 }
  0x30   :  { %vm83_vm6 = vcmp.gt.f32.partialorder %v76_v31, 0.0 }
  0xae   :  { %v66_v27 = vpop.xlane.xlu0 %65 }
  0xaf   :  { %696 = vrsqrt.f32 %v66_v27  ;;  %vm77_vm4 = vcmp.gt.f32.partialorder %v66_v27, 0.0  ;;  %v414_v27 = vpack.c.bf16 %v412_v26, %v411_v25 }
  0xb2   :  { %v69_v30 = vpop.xlane.xlu0 %68 }
  0xb3   :  { %698 = vrsqrt.f32 %v69_v30  ;;  %vm78_vm5 = vcmp.gt.f32.partialorder %v69_v30, 0.0 }
  0xb4   :  { %700 = vrsqrt.f32 %v76_v31  ;;  %v403_v31 = vld [vmem:[%s941_s9] sm:$0xff] }
  0xb9   :  { %v697_v32 = vpop.eup %696 }
  0xba   :  { %v81_v34 = vsel %vm77_vm4, %v697_v32, 0.0  ;;  %v404_v32 = vld [vmem:[%s941_s9 + $0x8] sm:$0xff] }
  0xbb   :  { %v86_v37 = vmul.f32 %v81_v34, %v61_v19  ;;  %v409_v19 = vld [vmem:[%s940_s10] sm:$0xff] }
  0xbd   :  { %v699_v33 = vpop.eup %698 }
  0xbe   :  { %v82_v35 = vsel %vm78_vm5, %v699_v33, 0.0  ;;  %v701_v36 = vpop.eup %700 }
  0xbf   :  { %v87_v38 = vmul.f32 %v82_v35, %v62_v20  ;;  %v85_v39 = vsel %vm83_vm6, %v701_v36, 0.0  ;;  %v410_v20 = vld [vmem:[%s940_s10 + $0x8] sm:$0xff]  ;;  %v407_v35 = vpack.c.bf16 %v404_v32, %v403_v31  ;;  %v405_v36 = vld [vmem:[%s941_s9 + $0x10] sm:$0xff] }
  0xc0   :  { %v88_v42 = vmul.f32 %v86_v37, %v85_v39  ;;  %v413_v23 = vpack.c.bf16 %v410_v20, %v409_v19  ;;  %v406_v37 = vld [vmem:[%s941_s9 + $0x18] sm:$0xff] }
  0xc1   :  { %v89_v43 = vmul.f32 %v87_v38, %v85_v39 }
  0xc3   :  { %v814_v47 = vpack.c.bf16 %v89_v43, %v88_v42  ;;  %v497_v43 = vld [vmem:[%s942_s11] sm:$0xff] }
  0xdb   :  { %v138_v40 = vpop.f32.mrb[0].mxu0 }
  0xdc   :  { %v626_v41 = vpop.f32.mrb[1].mxu0 }
  0xdd   :  { %v141_v44 = vpop.f32.mrb[2].mxu0 }
  0xde   :  { %v145_v45 = vpack.c.bf16 %v141_v44, %v138_v40  ;;  %v627_v46 = vpop.f32.mrb[3].mxu0  ;;  %v408_v40 = vpack.c.bf16 %v406_v37, %v405_v36  ;;  %v498_v44 = vld [vmem:[%s942_s11 + $0x8] sm:$0xff] }
  0xdf   :  { %v499_v46 = vld [vmem:[%s942_s11 + $0x10] sm:$0xff] }
  0xe0   :  { %629 = vmatpush3.bf16.msra.mxu1 %v145_v45  ;;  %v501_v45 = vpack.c.bf16 %v498_v44, %v497_v43 }
  0xe1   :  { %642 = vmatprep.subr.bf16.mxu1 %v710_v0 }
  0xe3   :  { %631 = vmatmul.mubr.msk.bf16.vlgmr.msra.gmra.mrb[0].mxu1 %vm63_vm3, %v814_v47 }
  0xe4   :  { %644 = vmatprep.mubr.msk.bf16.mxu1 %vm711_vm1, %v710_v0 }
 0x1b6   :  { %v190_v55 = vpop.f32.mrb[0].mxu1 }
 0x1b7   :  { %v191_v56 = vadd.f32 %v587_v54, %v190_v55  ;;  %v632_v57 = vpop.f32.mrb[1].mxu1 }
 0x1b8   :  { %v193_v58 = vpop.f32.mrb[2].mxu1 }
 0x1b9   :  { %v194_v59 = vadd.f32 %v587_v54, %v193_v58  ;;  %v633_v60 = vpop.f32.mrb[3].mxu1  ;;  %v197_v61 = vmax.f32 %v191_v56, 0.0 }
 0x1bb   :  { %v198_v62 = vmax.f32 %v194_v59, 0.0 }
 0x1bd   :  { %v838_v63 = vpack.c.bf16 %v198_v62, %v197_v61 }
 0x1bf   :  { %639 = vmatmul.mubr.msk.bf16.vlgmr.msra.gmra.mrb[4].mxu0 %vm206_vm7, %v838_v63 }
 0x1c0   :  { %652 = vmatprep.mubr.msk.bf16.mxu0 %vm711_vm1, %v710_v0  ;;  %649 = vmatpush3.bf16.msra.mxu0 %v307_v8 }
 0x1c1   :  { %650 = vmatprep.subr.bf16.mxu0 %v710_v0 }
 0x1c4   :  { %651 = vmatpush3.bf16.msra.mxu0 %v308_v11 }
 0x1c5   :  { %662 = vmatprep.subr.bf16.mxu0 %v710_v0 }
 0x292   :  { %v244_v1 = vpop.f32.mrb[4].mxu0 }
 0x293   :  { %v640_v2 = vpop.f32.mrb[5].mxu0 }
 0x294   :  { %v247_v3 = vpop.f32.mrb[6].mxu0 }
 0x295   :  { %v251_v4 = vpack.c.bf16 %v247_v3, %v244_v1  ;;  %v641_v5 = vpop.f32.mrb[7].mxu0 }
 0x297   :  { %643 = vmatpush3.bf16.msra.mxu1 %v251_v4 }
 0x298   :  { %656 = vmatprep.subr.bf16.mxu1 %v710_v0 }
 0x29a   :  { %645 = vmatmul.mubr.msk.bf16.vlgmr.msra.gmra.mrb[4].mxu1 %vm63_vm3, %v814_v47 }
 0x29b   :  { %658 = vmatprep.mubr.msk.bf16.mxu1 %vm711_vm1, %v710_v0 }
 0x36d   :  { %v293_v13 = vpop.f32.mrb[4].mxu1 }
 0x36e   :  { %v294_v14 = vadd.f32 %v590_v12, %v293_v13  ;;  %v646_v15 = vpop.f32.mrb[5].mxu1 }
 0x36f   :  { %v296_v16 = vpop.f32.mrb[6].mxu1 }
 0x370   :  { %v297_v17 = vadd.f32 %v590_v12, %v296_v16  ;;  %v647_v18 = vpop.f32.mrb[7].mxu1  ;;  %v300_v21 = vmax.f32 %v294_v14, 0.0 }
 0x372   :  { %v301_v22 = vmax.f32 %v297_v17, 0.0 }
 0x374   :  { %v302_v24 = vpack.c.bf16 %v301_v22, %v300_v21 }
 0x376   :  { %653 = vmatmul.mubr.msk.bf16.vlgmr.msra.gmra.mrb[8].mxu0 %vm206_vm7, %v302_v24 }
 0x377   :  { %663 = vmatpush3.bf16.msra.mxu0 %v413_v23  ;;  %666 = vmatprep.mubr.msk.bf16.mxu0 %vm711_vm1, %v710_v0 }
 0x378   :  { %664 = vmatprep.subr.bf16.mxu0 %v710_v0 }
 0x37b   :  { %665 = vmatpush3.bf16.msra.mxu0 %v414_v27 }
 0x37c   :  { %678 = vmatprep.subr.bf16.mxu0 %v710_v0 }
 0x37e   :  { %667 = vmatmul.mubr.msk.bf16.vlgmr.msra.gmra.mrb[12].mxu0 %vm206_vm7, %v302_v24 }
 0x37f   :  { %682 = vmatprep.mubr.msk.bf16.mxu0 %vm711_vm1, %v710_v0  ;;  %679 = vmatpush3.bf16.msra.mxu0 %v501_v45 }
 0x380   :  { %680 = vmatprep.subr.bf16.mxu0 %v710_v0 }
 0x449   :  { %v346_v28 = vpop.f32.mrb[8].mxu0 }
 0x44a   :  { %v654_v29 = vpop.f32.mrb[9].mxu0 }
 0x44b   :  { %v349_v30 = vpop.f32.mrb[10].mxu0 }
 0x44c   :  { %v353_v33 = vpack.c.bf16 %v349_v30, %v346_v28  ;;  %v655_v34 = vpop.f32.mrb[11].mxu0 }
 0x44e   :  { %657 = vmatpush3.bf16.msra.mxu1 %v353_v33 }
 0x44f   :  { %670 = vmatprep.subr.bf16.mxu1 %v710_v0 }
 0x451   :  { %659 = vmatmul.mubr.msk.bf16.vlgmr.msra.gmra.mrb[8].mxu1 %vm63_vm3, %v814_v47  ;;  %v449_v38 = vpop.f32.mrb[12].mxu0  ;;  %v500_v47 = vld [vmem:[%s942_s11 + $0x18] sm:$0xff] }
 0x452   :  { %v668_v39 = vpop.f32.mrb[13].mxu0  ;;  %671 = vmatpush3.bf16.msra.mxu1 %v407_v35  ;;  %674 = vmatprep.mubr.msk.bf16.mxu1 %vm711_vm1, %v710_v0  ;;  %v502_v48 = vpack.c.bf16 %v500_v47, %v499_v46 }
 0x453   :  { %v452_v41 = vpop.f32.mrb[14].mxu0  ;;  %672 = vmatprep.subr.bf16.mxu1 %v710_v0 }
 0x454   :  { %v669_v42 = vpop.f32.mrb[15].mxu0  ;;  %681 = vmatpush3.bf16.msra.mxu0 %v502_v48 }
 0x456   :  { %673 = vmatpush3.bf16.msra.mxu1 %v408_v40 }
 0x459   :  { %675 = vmatmul.mubr.msk.bf16.vlgmr.msra.gmra.mrb[12].mxu1 %vm206_vm7, %v838_v63  ;;  %v598_v63 = vld [vmem:[%s944_s12] ss:$0 sm:$0xff] }
 0x524   :  { %v395_v50 = vpop.f32.mrb[8].mxu1 }
 0x525   :  { %v660_v51 = vpop.f32.mrb[9].mxu1  ;;  %v396_v53 = vadd.f32 %v593_v49, %v395_v50 }
 0x526   :  { %v398_v52 = vpop.f32.mrb[10].mxu1 }
 0x527   :  { %v399_v54 = vadd.f32 %v593_v49, %v398_v52  ;;  %v661_v0 = vpop.f32.mrb[11].mxu1 }
 0x529   :  { %v402_v55 = vpack.c.bf16 %v399_v54, %v396_v53 }
 0x52b   :  { %683 = vmatmul.mubr.msk.bf16.vlgmr.msra.gmra.mrb[16].mxu0 %vm206_vm7, %v402_v55 }
 0x52c   :  { %v490_v56 = vpop.f32.mrb[12].mxu1 }
 0x52d   :  { %v491_v57 = vadd.f32 %v490_v56, %v449_v38  ;;  %v676_v58 = vpop.f32.mrb[13].mxu1 }
 0x52e   :  { %v493_v59 = vpop.f32.mrb[14].mxu1 }
 0x52f   :  { %v494_v60 = vadd.f32 %v493_v59, %v452_v41  ;;  %v677_v61 = vpop.f32.mrb[15].mxu1 }
 0x5fe   :  { %v540_v62 = vpop.f32.mrb[16].mxu0 }
 0x5ff   :  { %v547_v1 = vadd.f32 %v540_v62, %v491_v57  ;;  %v684_v2 = vpop.f32.mrb[17].mxu0 }
 0x600   :  { %v543_v3 = vpop.f32.mrb[18].mxu0 }
 0x601   :  { %v548_v4 = vadd.f32 %v543_v3, %v494_v60  ;;  %v685_v5 = vpop.f32.mrb[19].mxu0  ;;  %v556_v6 = vadd.f32 %v598_v63, %v547_v1 }
 0x603   :  { %558 = vmax.xlane.f32.xlu1 %v556_v6  ;;  %v557_v7 = vadd.f32 %v598_v63, %v548_v4 }
 0x607   :  { %560 = vmax.xlane.f32.xlu1 %v557_v7 }
 0x690   :  { %v559_v8 = vpop.xlane.xlu1 %558 }
 0x691   :  { %v562_v9 = vsub.f32 %v556_v6, %v559_v8 }
 0x693   :  { %v564_v10 = vmul.f32 1.442695, %v562_v9 }
 0x694   :  { %v561_v11 = vpop.xlane.xlu1 %560 }
 0x695   :  { %702 = vpow2.f32 %v564_v10  ;;  %v563_v12 = vsub.f32 %v557_v7, %v561_v11 }
 0x697   :  { %v566_v13 = vmul.f32 1.442695, %v563_v12 }
 0x699   :  { %704 = vpow2.f32 %v566_v13 }
 0x69f   :  { %v703_v14 = vpop.eup %702 }
 0x6a0   :  { %568 = vadd.xlane.f32.xlu0 %v703_v14 }
 0x6a3   :  { %v705_v15 = vpop.eup %704 }
 0x6a4   :  { %570 = vadd.xlane.f32.xlu1 %v705_v15 }
 0x72d   :  { %v569_v16 = vpop.xlane.xlu0 %568 }
 0x72e   :  { %706 = vlog2.f32 %v569_v16 }
 0x731   :  { %v571_v17 = vpop.xlane.xlu1 %570 }
 0x732   :  { %708 = vlog2.f32 %v571_v17 }
 0x738   :  { %v707_v18 = vpop.eup %706 }
 0x739   :  { %v573_v19 = vmul.f32 0.6931472, %v707_v18 }
 0x73b   :  { %v576_v20 = vsub.f32 %v562_v9, %v573_v19 }
 0x73c   :  { %v709_v21 = vpop.eup %708 }
 0x73d   :  { %578 = vst [vmem:[%s945_s13] sm:$0xff] %v576_v20  ;;  %v575_v22 = vmul.f32 0.6931472, %v709_v21 }
 0x73f   :  { %v577_v23 = vsub.f32 %v563_v12, %v575_v22 }
 0x741   :  { %579 = vst [vmem:[%s945_s13 + $0x8] sm:$0xff] %v577_v23 }

</bundles_post_ra>
